<compile_context>
chip_gen: v7x
topology: tpu7x:2x2x1
jax: 0.10.0
libtpu: 0.0.40
codegen_flags: <defaults>
</compile_context>

<pallas_src>
import math

import jax
import jax.numpy as jnp
from jax.experimental import pallas as pl
from jax.experimental.pallas import tpu as pltpu


def _round_up(a, b):
    return (a + b - 1) // b * b


# ---------------------------------------------------------------------------
# Fused KAN conv kernel: one grid step = one (batch, pixel-tile) block.
#   p_ref : (C_all, TN)   bf16 im2col patches of the RAW input
#                         (tap-major / channel-minor rows, pixel axis lane-dense)
#   wb_ref: (Cout, C_all) bf16 base weight                  (resident)
#   ws_ref: (Cout, C_all) bf16 convert-folded spline weight (resident)
#   o_ref : (Cout, TN)    f32 output block -> directly NCHW-ordered
#
# Base path: SiLU applied in-kernel in f32 (v5e-safe; SiLU(0)=0 keeps the
# zero-pad rewrites exact).  Both paths feed the MXU as bf16, f32 accumulate.
# ---------------------------------------------------------------------------
def _kan_conv_kernel(p_ref, wb_ref, ws_ref, o_ref):
    p = p_ref[...]                                            # (C_all, TN) bf16
    pf = p.astype(jnp.float32)
    silu_p = (pf * jax.nn.sigmoid(pf)).astype(jnp.bfloat16)   # SiLU(0) == 0
    acc = jnp.dot(wb_ref[...], silu_p, preferred_element_type=jnp.float32)
    acc = acc + jnp.dot(ws_ref[...], p, preferred_element_type=jnp.float32)
    o_ref[...] = acc


# ---------------------------------------------------------------------------
# Glue (pure JAX, data movement only): im2col + weight folding.
# ---------------------------------------------------------------------------
def _im2col_taps(x_cf, K, H_out, W_out):
    # x_cf: (B, C, Hp, Wp) -> (B, K*K*C, H_out*W_out), tap-major / channel-minor.
    B, C = x_cf.shape[:2]
    taps = []
    for kh in range(K):
        for kw in range(K):
            taps.append(
                x_cf[:, :, kh:kh + H_out, kw:kw + W_out].reshape(B, C, H_out * W_out))
    return jnp.concatenate(taps, axis=1)


def kan_conv2d(x_nchw, params, *, stride=1, padding=0, dilation=1, groups=1,
               tile_n=4096):
    # TODO(synk): only stride=1, dilation=1, groups=1 (the module defaults) are implemented.
    assert stride == 1 and dilation == 1 and groups == 1

    base_w = params["base_weight"]        # (Cout, Cin, K, K)
    conv_w = params["convert_weight"]     # (Cin*S, Cin, 1, 1)
    spline_w = params["spline_weight"]    # (Cout, Cin, K, K, S)
    scaler = params["spline_scaler"]      # (Cout, Cin, K, K)

    Cout, Cin, K, _ = base_w.shape
    S = spline_w.shape[-1]
    B, _, H, W = x_nchw.shape
    KK = K * K
    C_all = KK * Cin

    # ---- weight prep (runs once per call; pure weight-space math) ----
    # scaled_spline_weight flattened as 'out inc k1 k2 s -> out (inc s) k1 k2'
    scaled = spline_w * scaler[..., None]
    spline_flat = jnp.transpose(scaled, (0, 1, 4, 2, 3)).reshape(Cout, Cin * S, K, K)
    wc = conv_w[:, :, 0, 0]                                   # (Cin*S, Cin)
    # Fold the 1x1 convert conv into the spline conv (exact, both linear):
    #   spline_out = conv(x @ WcT, Ws)  ==  conv(x, einsum('omhw,mc->ochw', Ws, Wc))
    wsf = jnp.einsum("omhw,mc->ochw", spline_flat, wc)        # (Cout, Cin, K, K)

    # Tap-major / channel-minor flattening matching the im2col row order.
    wb_flat = jnp.transpose(base_w, (0, 2, 3, 1)).reshape(Cout, C_all).astype(jnp.bfloat16)
    ws_flat = jnp.transpose(wsf, (0, 2, 3, 1)).reshape(Cout, C_all).astype(jnp.bfloat16)

    # ---- input prep (bf16 BEFORE im2col: halves every amplified byte) ----
    x = x_nchw
    if padding:
        x = jnp.pad(x, ((0, 0), (0, 0), (padding, padding), (padding, padding)))
    x = x.astype(jnp.bfloat16)
    Hp, Wp = H + 2 * padding, W + 2 * padding
    H_out, W_out = Hp - K + 1, Wp - K + 1
    N = H_out * W_out

    # Single im2col of the raw input; the base path derives SiLU in-kernel.
    patches = _im2col_taps(x, K, H_out, W_out)                # (B, C_all, N) bf16

    # ---- pixel tiling (lane axis; multiple of 128 or full extent) ----
    N128 = _round_up(N, 128)
    tn = min(_round_up(tile_n, 128), N128)
    # v7x megacore: prefer >= 2 total grid blocks so both TensorCores get work.
    if B * pl.cdiv(N128, tn) < 2 and N128 >= 256:
        tn = _round_up(pl.cdiv(N, 2), 128)
    Npad = _round_up(N, tn)
    if Npad != N:
        patches = jnp.pad(patches, ((0, 0), (0, 0), (0, Npad - N)))

    # Real VMEM need (double-buffered patch/out blocks + resident weights);
    # keep comfortably under v7x's 64 MiB physical VMEM.
    vmem_need = (2 * C_all * tn * 2) + (2 * Cout * tn * 4) + (2 * Cout * C_all * 2)
    vmem_limit = min(max(2 * vmem_need + (2 << 20), 8 << 20), 32 << 20)

    out = pl.pallas_call(
        _kan_conv_kernel,
        out_shape=jax.ShapeDtypeStruct((B, Cout, Npad), jnp.float32),
        grid_spec=pltpu.PrefetchScalarGridSpec(
            num_scalar_prefetch=0,
            grid=(B, Npad // tn),
            in_specs=[
                pl.BlockSpec((pl.Squeezed(), C_all, tn), lambda b, j: (b, 0, j)),
                pl.BlockSpec((Cout, C_all), lambda b, j: (0, 0)),
                pl.BlockSpec((Cout, C_all), lambda b, j: (0, 0)),
            ],
            out_specs=pl.BlockSpec((pl.Squeezed(), Cout, tn), lambda b, j: (b, 0, j)),
        ),
        compiler_params=pltpu.CompilerParams(
            dimension_semantics=("parallel", "parallel"),
            vmem_limit_bytes=vmem_limit,
        ),
    )(patches, wb_flat, ws_flat)

    if Npad != N:
        out = out[:, :, :N]
    # Output is already channels-first: (B, Cout, N) -> NCHW.
    return out.reshape(B, Cout, H_out, W_out)


# ---------------------------------------------------------------------------
# Pure-JAX reference (mirrors the PyTorch forward with F.conv2d semantics).
# ---------------------------------------------------------------------------
def kan_conv2d_reference(x, params, *, padding=0):
    dn = ("NCHW", "OIHW", "NCHW")
    pad = [(padding, padding), (padding, padding)]
    base_out = jax.lax.conv_general_dilated(
        jax.nn.silu(x), params["base_weight"], (1, 1), pad, dimension_numbers=dn)
    x_convert = jax.lax.conv_general_dilated(
        x, params["convert_weight"], (1, 1), [(0, 0), (0, 0)], dimension_numbers=dn)
    Cout, Cin, K, _, S = params["spline_weight"].shape
    scaled = params["spline_weight"] * params["spline_scaler"][..., None]
    spline_flat = jnp.transpose(scaled, (0, 1, 4, 2, 3)).reshape(Cout, Cin * S, K, K)
    spline_out = jax.lax.conv_general_dilated(
        x_convert, spline_flat, (1, 1), pad, dimension_numbers=dn)
    return base_out + spline_out


if __name__ == "__main__":
    # Small shapes consistent with the module.
    B, Cin, H, W = 2, 4, 16, 16
    Cout, K = 8, 3
    grid_size, spline_order = 5, 3
    S = grid_size + spline_order          # 8

    key = jax.random.PRNGKey(0)
    ks = jax.random.split(key, 5)

    def _uniform(k, shape, fan_in):
        # Deterministic kaiming-uniform-style init (synthetic parameters).
        bound = 1.0 / math.sqrt(fan_in)
        return jax.random.uniform(k, shape, jnp.float32, -bound, bound)

    # NOTE: the torch module initialises spline_weight via curve2coeff
    # (torch.linalg.lstsq) on noise — init-time only; replaced here by a
    # deterministic random init of the correct shape.
    params = {
        "base_weight":    _uniform(ks[0], (Cout, Cin, K, K), Cin * K * K),
        "convert_weight": _uniform(ks[1], (Cin * S, Cin, 1, 1), Cin),
        "spline_weight":  _uniform(ks[2], (Cout, Cin, K, K, S), Cin * K * K),
        "spline_scaler":  _uniform(ks[3], (Cout, Cin, K, K), Cin * K * K),
    }
    x = jax.random.normal(ks[4], (B, Cin, H, W), jnp.float32)

    for padding in (0, 1):                # module default is 0; also check pad path
        out = kan_conv2d(x, params, padding=padding)
        out = jax.block_until_ready(out)
        ref = kan_conv2d_reference(x, params, padding=padding)
        assert out.shape == ref.shape, (out.shape, ref.shape)
        max_err = float(jnp.max(jnp.abs(out - ref)))
        if not jnp.allclose(out, ref, atol=5e-2, rtol=5e-2):
            raise AssertionError(
                f"Pallas output mismatch (padding={padding}), max abs err = {max_err}")

    print("KERNEL_OK")
</pallas_src>

<mosaic_0001>
module attributes {stable_mosaic.version = 11 : i64} {
  func.func @_kan_conv_kernel(%arg0: i32, %arg1: i32, %arg2: memref<1x36x256xbf16, #tpu.memory_space<vmem>>, %arg3: memref<8x36xbf16, #tpu.memory_space<vmem>>, %arg4: memref<8x36xbf16, #tpu.memory_space<vmem>>, %arg5: memref<1x8x256xf32, #tpu.memory_space<vmem>>) attributes {dimension_semantics = [#tpu.dimension_semantics<parallel>, #tpu.dimension_semantics<parallel>], iteration_bounds = array<i64: 2, 1>, scalar_prefetch = 0 : i64, scratch_operands = 0 : i64, tpu.core_type = #tpu.core_type<tc>, window_params = [{transform_indices = @transform_0, window_bounds = array<i64: 1, 36, 256>}, {pipeline_mode = #tpu.pipeline_mode<synchronous>, transform_indices = @transform_1, window_bounds = array<i64: 8, 36>}, {pipeline_mode = #tpu.pipeline_mode<synchronous>, transform_indices = @transform_2, window_bounds = array<i64: 8, 36>}, {transform_indices = @transform_3, window_bounds = array<i64: 1, 8, 256>}]} {
    %c0 = arith.constant 0 : index
    %c0_0 = arith.constant 0 : index
    %c0_1 = arith.constant 0 : index
    %0 = vector.load %arg2[%c0, %c0_0, %c0_1] : memref<1x36x256xbf16, #tpu.memory_space<vmem>>, vector<1x36x256xbf16>
    %1 = vector.shape_cast %0 : vector<1x36x256xbf16> to vector<36x256xbf16>
    %2 = arith.extf %1 : vector<36x256xbf16> to vector<36x256xf32>
    %3 = arith.negf %2 : vector<36x256xf32>
    %4 = math.exp %3 : vector<36x256xf32>
    %cst = arith.constant 1.000000e+00 : f32
    %5 = vector.broadcast %cst : f32 to vector<36x256xf32>
    %6 = arith.addf %5, %4 : vector<36x256xf32>
    %7 = arith.divf %5, %6 : vector<36x256xf32>
    %8 = arith.mulf %2, %7 : vector<36x256xf32>
    %9 = arith.truncf %8 : vector<36x256xf32> to vector<36x256xbf16>
    %c0_2 = arith.constant 0 : index
    %c0_3 = arith.constant 0 : index
    %10 = vector.load %arg3[%c0_2, %c0_3] : memref<8x36xbf16, #tpu.memory_space<vmem>>, vector<8x36xbf16>
    %cst_4 = arith.constant dense<0.000000e+00> : vector<8x256xf32>
    %11 = tpu.matmul %10, %9, %cst_4 {dimension_numbers = #tpu.dot_dimension_numbers<[1], [0], [0], [1], [0, 0, 1, 1], [], []>} : vector<8x36xbf16>, vector<36x256xbf16>, vector<8x256xf32> -> vector<8x256xf32>
    %c0_5 = arith.constant 0 : index
    %c0_6 = arith.constant 0 : index
    %12 = vector.load %arg4[%c0_5, %c0_6] : memref<8x36xbf16, #tpu.memory_space<vmem>>, vector<8x36xbf16>
    %cst_7 = arith.constant dense<0.000000e+00> : vector<8x256xf32>
    %13 = tpu.matmul %12, %1, %cst_7 {dimension_numbers = #tpu.dot_dimension_numbers<[1], [0], [0], [1], [0, 0, 1, 1], [], []>} : vector<8x36xbf16>, vector<36x256xbf16>, vector<8x256xf32> -> vector<8x256xf32>
    %14 = arith.addf %11, %13 : vector<8x256xf32>
    %c0_8 = arith.constant 0 : index
    %c0_9 = arith.constant 0 : index
    %c0_10 = arith.constant 0 : index
    %15 = vector.load %arg5[%c0_8, %c0_9, %c0_10] : memref<1x8x256xf32, #tpu.memory_space<vmem>>, vector<1x8x256xf32>
    %16 = vector.shape_cast %15 : vector<1x8x256xf32> to vector<8x256xf32>
    %17 = vector.shape_cast %14 : vector<8x256xf32> to vector<1x8x256xf32>
    tpu.vector_store %arg5[%c0_8, %c0_9, %c0_10], %17 {strides = array<i32>} : memref<1x8x256xf32, #tpu.memory_space<vmem>>, vector<1x8x256xf32>,
    return
  }
  func.func @transform_0(%arg0: i32, %arg1: i32) -> (i32, i32, i32) {
    %c0_i32 = arith.constant 0 : i32
    %c0_i32_0 = arith.constant 0 : i32
    return %arg0, %c0_i32, %arg1 : i32, i32, i32
  }
  func.func @transform_1(%arg0: i32, %arg1: i32) -> (i32, i32) {
    %c0_i32 = arith.constant 0 : i32
    %c0_i32_0 = arith.constant 0 : i32
    %c0_i32_1 = arith.constant 0 : i32
    return %c0_i32, %c0_i32_0 : i32, i32
  }
  func.func @transform_2(%arg0: i32, %arg1: i32) -> (i32, i32) {
    %c0_i32 = arith.constant 0 : i32
    %c0_i32_0 = arith.constant 0 : i32
    %c0_i32_1 = arith.constant 0 : i32
    return %c0_i32, %c0_i32_0 : i32, i32
  }
  func.func @transform_3(%arg0: i32, %arg1: i32) -> (i32, i32, i32) {
    %c0_i32 = arith.constant 0 : i32
    %c0_i32_0 = arith.constant 0 : i32
    return %arg0, %c0_i32, %arg1 : i32, i32, i32
  }
}

</mosaic_0001>

<bundles_post_ra>
// kernel: tpu_custom_call.1
= control target key start
LH: loop header
LB: loop body
LE: loop exit
PB: predicated region body
PF: predicated region fallthrough
CT: control target
= control target key end

     0   :  { %8 = vsyncpa [#allocation3], 0  ;;  %s952_s0 = inlined_call_operand.vmem [shape: bf16[2,36,256], index: 0, kind: input, shape index: {}]   ;;  %s953_s1 = inlined_call_operand.vmem [shape: bf16[8,36], index: 1, kind: input, shape index: {}]   ;;  %s954_s2 = inlined_call_operand.vmem [shape: bf16[8,36], index: 2, kind: input, shape index: {}]   ;;  %s955_s3 = inlined_call_operand.hbm [shape: f32[2,8,256], index: 3, kind: output, shape index: {}]  }
   0x1   :  { %10 = vsyncpa [#allocation3 + $0x1], 0  ;;  %s756_s12 = smov 0   ;;  %s758_s13 = smov 0  }
   0x2   :  { %s760_s14 = smov 0   ;;  %s762_s15 = smov 0  }
   0x3   :  { %s764_s16 = smov 0   ;;  %s766_s17 = smov 0  }
   0x4 LB: > { %s516_s18 = sadd.s32 4294967295, %s732_s17   ;;  %s517_s19 = sadd.s32 4294967294, %s732_s17   ;;  %s732_s17 = sphi %s766_s17, %s16_s17   ;;  %s728_s16 = sphi %s764_s16, %s962_s16   ;;  %s724_s15 = sphi %s762_s15, %s961_s15   ;;  %s720_s14 = sphi %s760_s14, %s960_s14   ;;  %s716_s13 = sphi %s758_s13, %s959_s13   ;;  %s712_s12 = sphi %s756_s12, %s958_s12  }
   0x5   : > { %s28_s20 = sadd.s32 1, %s728_s16  ;;  %s107_s21 = sadd.s32 1, %s720_s14 }
   0x6   : > { %p30_p0 = scmp.ge.s32.totalorder %s28_s20, 2  ;;  %p117_p1 = scmp.ne.s32.totalorder %s720_s14, %s716_s13 }
   0x7   : > { %p118_p2 = scmp.eq.s32.totalorder %s516_s18, 1  ;;  %p123_p3 = scmp.ne.s32.totalorder %s716_s13, %s712_s12 }
   0x8   : > { %s964_s20 = smov (%p30_p0, %s28_s20), 0  ;;  %p124_p5 = scmp.eq.s32.totalorder %s517_s19, 1 }
   0x9   : > { %p796_p4 = por %p118_p2, %p117_p1  ;;  %s102_s23 = ssub.s32 %s728_s16, %s964_s20 }
   0xa   : > { %p520_p6 = scmp.ge.s32.totalorder %s732_s17, 1  ;;  %p105_p7 = scmp.eq.s32.totalorder %s102_s23, 0 }
   0xb   : > { %p803_p8 = por %p124_p5, %p123_p3  ;;  %p161_p9 = scmp.lt.s32.totalorder %s732_s17, 3 }
   0xc   : > { %s809_s25 = scalar_select %p105_p7, %s720_s14, %s107_s21  }
   0xd   : > { %p162_p10 = pnand %p520_p6, %p161_p9 }
   0xe   : > { %p190_p11 = scmp.lt.s32.totalorder (!%p162_p10), %s724_s15, 1  ;;  %v734_v0 = vmov (!%p162_p10), 0   ;;  %vm323_vm0 = vcmask (!%p162_p10), 1041408   ;;  %v293_v33 = vld [vmem:[%s954_s2] sm:$0xf] (!%p162_p10)  ;;  %vm319_vm1 = vcmask (!%p162_p10), 293888  }
   0xf   : > { %165 = sbr.rel (%p162_p10) target bundleno = 303 (0x12f), region = 32  ;;  %362 = vmatprep.mubr.bf16.mxu1 (!%p162_p10), %v734_v0  ;;  %412 = vmatprep.mubr.bf16.mxu0 (!%p162_p10), %v734_v0  ;;  %s186_s8 = sand.u32 (!%p162_p10), 1, %s716_s13  }
  0x10   : > { %s521_s9 = sshll.u32 (!%p162_p10), %s186_s8, 4  ;;  %s548_s10 = sshll.u32 (!%p162_p10), %s724_s15, 8 }
  0x11   : > { %s188_s11 = scalar_lea.vmem (!%p162_p10), [#allocation2], %s521_s9  ;;  %s905_s23 = scalar_lea.hbm (!%p162_p10), %s955_s3, %s548_s10 }
  0x12   : > { %s440_s18 = sshll.u32 (!%p162_p10), %s188_s11, 4  ;;  %s907_s18 = int_to_ptr.vmem [resolvable:$true] %s440_s18 }
  0x16   : > { %s191_s26 = scalar_select %p190_p11, %s724_s15, 1 }
  0x17   : > { %s424_s15 = scalar_lea.sflag [#allocation3], %s186_s8 }
  0x18   : > { %s551_s27 = smul.u32 40, %s191_s26  ;;  %s654_s26 = scalar_lea.vmem %s907_s18, 256 }
  0x19   : > { %p655_p12 = scmp.ne.s32.totalorder %s907_s18, %s654_s26 }
  0x1a   : > { %s197_s30 = scalar_lea.vmem %s952_s0, %s551_s27  ;;  %s735_s27 = smov [#allocation2]  }
  0x1b   : > { %v816_v1 = vld [vmem:[%s197_s30] sm:$0xff]  ;;  %v818_v2 = vld [vmem:[%s197_s30 + $0x8] sm:$0xff]  ;;  %v820_v3 = vld [vmem:[%s197_s30 + $0x10] sm:$0xff]  ;;  %p656_p13 = pnand %p655_p12, %p796_p4  ;;  %s658_s28 = sshll.u32 %s735_s27, 4  ;;  %s659_s28 = int_to_ptr.vmem [resolvable:$false] %s658_s28 }
  0x1c   : > { %v534_v4 = vcombine.high %v816_v1, %v818_v2  ;;  %v533_v5 = vcombine.low %v816_v1, %v818_v2  ;;  %v207_v6 = vunpack.c.h.bf16 %v816_v1  ;;  %v209_v7 = vunpack.c.h.bf16 %v818_v2  ;;  %v828_v8 = vld [vmem:[%s197_s30 + $0x18] sm:$0xff]  ;;  %v840_v16 = vld [vmem:[%s197_s30 + $0x20] sm:$0x33]  ;;  %s660_s29 = scalar_lea.vmem %s659_s28, 512  ;;  %p661_p1 = scmp.lt.s32.totalorder %s907_s18, %s659_s28 }
  0x1d   : > { %v536_v9 = vcombine.high %v820_v3, %v828_v8  ;;  %v206_v10 = vunpack.c.l.bf16 %v816_v1  ;;  %v208_v11 = vunpack.c.l.bf16 %v818_v2  ;;  %v211_v14 = vunpack.c.h.bf16 %v820_v3  ;;  %p657_p0 = pneg %p656_p13  ;;  %p662_p2 = scmp.lt.s32.totalorder %s660_s29, %s654_s26 }
  0x1e   : > { %330 = vmatprep.subr.bf16.mxu1 %v534_v4  ;;  %v524_v12 = vmul.f32 -1.442695, %v207_v6  ;;  %v526_v13 = vmul.f32 -1.442695, %v209_v7  ;;  %v213_v15 = vunpack.c.h.bf16 %v828_v8  ;;  %v535_v19 = vcombine.low %v820_v3, %v828_v8 }
  0x1f   : > { %331 = vmatpush1.bf16.msra.mxu1 %v533_v5  ;;  %v523_v17 = vmul.f32 -1.442695, %v206_v10  ;;  %v525_v18 = vmul.f32 -1.442695, %v208_v11  ;;  %v210_v20 = vunpack.c.l.bf16 %v820_v3  ;;  %v528_v21 = vmul.f32 -1.442695, %v211_v14  ;;  %p663_p3 = por %p662_p2, %p661_p1 }
  0x20   : > { %614 = vpow2.f32 %v524_v12  ;;  %332 = vmatprep.subr.bf16.mxu1 %v536_v9  ;;  %v538_v22 = vcombine.high %v840_v16, %v840_v16  ;;  %v212_v23 = vunpack.c.l.bf16 %v828_v8  ;;  %v530_v24 = vmul.f32 -1.442695, %v213_v15  ;;  %v292_v8 = vld [vmem:[%s953_s1] sm:$0xf] }
  0x21   : > { %616 = vpow2.f32 %v526_v13  ;;  %v537_v25 = vcombine.low %v840_v16, %v840_v16  ;;  %v215_v26 = vunpack.c.h.bf16 %v840_v16  ;;  %v527_v27 = vmul.f32 -1.442695, %v210_v20  ;;  %p664_p5 = pnand %p663_p3, %p657_p0 }
  0x22   : > { %618 = vpow2.f32 %v523_v17  ;;  %v214_v28 = vunpack.c.l.bf16 %v840_v16  ;;  %v529_v29 = vmul.f32 -1.442695, %v212_v23 }
  0x23   : > { %620 = vpow2.f32 %v525_v18  ;;  %333 = vmatpush1.bf16.msra.mxu1 %v535_v19  ;;  %v325_v30 = vsel %vm323_vm0, %v537_v25, 0  ;;  %v532_v31 = vmul.f32 -1.442695, %v215_v26 }
  0x24   : > { %622 = vpow2.f32 %v528_v21  ;;  %539 = vmatprep.subr.msk.bf16.mxu1 %vm323_vm0, %v538_v22  ;;  %v531_v32 = vmul.f32 -1.442695, %v214_v28 }
  0x25   : > { %624 = vpow2.f32 %v530_v24 }
  0x26   : > { %626 = vpow2.f32 %v527_v27 }
  0x27   : > { %628 = vpow2.f32 %v529_v29  ;;  %335 = vmatpush1.bf16.msra.mxu1 %v325_v30 }
  0x28   : > { %630 = vpow2.f32 %v532_v31 }
  0x29   : > { %632 = vpow2.f32 %v531_v32 }
  0x2a   : > { %v615_v34 = vpop.eup %614  ;;  %540 = vmatmul.mubr.msk.bf16.vlgmr.msra.gmra.mrb[0].mxu1 %vm319_vm1, %v293_v33 }
  0x2b   : > { %v617_v35 = vpop.eup %616  ;;  %v247_v36 = vadd.f32 1.0, %v615_v34 }
  0x2c   : > { %v619_v37 = vpop.eup %618  ;;  %v249_v38 = vadd.f32 1.0, %v617_v35 }
  0x2d   : > { %v621_v39 = vpop.eup %620  ;;  %634 = vrcp.f32 %v247_v36  ;;  %v246_v40 = vadd.f32 1.0, %v619_v37 }
  0x2e   : > { %v623_v41 = vpop.eup %622  ;;  %636 = vrcp.f32 %v249_v38  ;;  %v248_v42 = vadd.f32 1.0, %v621_v39 }
  0x2f   : > { %v625_v43 = vpop.eup %624  ;;  %638 = vrcp.f32 %v246_v40  ;;  %v251_v44 = vadd.f32 1.0, %v623_v41 }
  0x30   : > { %v627_v45 = vpop.eup %626  ;;  %640 = vrcp.f32 %v248_v42  ;;  %v253_v46 = vadd.f32 1.0, %v625_v43 }
  0x31   : > { %v629_v47 = vpop.eup %628  ;;  %642 = vrcp.f32 %v251_v44  ;;  %v250_v48 = vadd.f32 1.0, %v627_v45 }
  0x32   : > { %v631_v49 = vpop.eup %630  ;;  %644 = vrcp.f32 %v253_v46  ;;  %v252_v50 = vadd.f32 1.0, %v629_v47 }
  0x33   : > { %v633_v51 = vpop.eup %632  ;;  %646 = vrcp.f32 %v250_v48  ;;  %v255_v52 = vadd.f32 1.0, %v631_v49 }
  0x34   : > { %648 = vrcp.f32 %v252_v50  ;;  %v254_v53 = vadd.f32 1.0, %v633_v51 }
  0x35   : > { %650 = vrcp.f32 %v255_v52 }
  0x36   : > { %652 = vrcp.f32 %v254_v53 }
  0x37   : > { %v635_v54 = vpop.eup %634 }
  0x38   : > { %v637_v55 = vpop.eup %636  ;;  %v277_v56 = vmul.f32 %v635_v54, %v207_v6 }
  0x39   : > { %v639_v57 = vpop.eup %638  ;;  %v279_v58 = vmul.f32 %v637_v55, %v209_v7 }
  0x3a   : > { %v641_v59 = vpop.eup %640  ;;  %v276_v60 = vmul.f32 %v639_v57, %v206_v10 }
  0x3b   : > { %v643_v61 = vpop.eup %642  ;;  %v287_v62 = vpack.c.bf16 %v279_v58, %v277_v56  ;;  %v278_v63 = vmul.f32 %v641_v59, %v208_v11 }
  0x3c   : > { %v645_v0 = vpop.eup %644  ;;  %v281_v4 = vmul.f32 %v643_v61, %v211_v14 }
  0x3d   : > { %v647_v5 = vpop.eup %646  ;;  %380 = vmatprep.subr.bf16.mxu0 %v287_v62  ;;  %v286_v6 = vpack.c.bf16 %v278_v63, %v276_v60  ;;  %v283_v9 = vmul.f32 %v645_v0, %v213_v15 }
  0x3e   : > { %v649_v7 = vpop.eup %648  ;;  %v280_v1 = vmul.f32 %v647_v5, %v210_v20 }
  0x3f   : > { %v651_v10 = vpop.eup %650  ;;  %381 = vmatpush1.bf16.msra.mxu0 %v286_v6  ;;  %v289_v12 = vpack.c.bf16 %v283_v9, %v281_v4  ;;  %v282_v2 = vmul.f32 %v649_v7, %v212_v23 }
  0x40   : > { %v653_v11 = vpop.eup %652  ;;  %v285_v13 = vmul.f32 %v651_v10, %v215_v26 }
  0x41   : > { %382 = vmatprep.subr.bf16.mxu0 %v289_v12  ;;  %v288_v14 = vpack.c.bf16 %v282_v2, %v280_v1  ;;  %v284_v15 = vmul.f32 %v653_v11, %v214_v28 }
  0x42   : > { %v291_v17 = vpack.c.bf16 %v285_v13, %v285_v13 }
  0x43   : > { %383 = vmatpush1.bf16.msra.mxu0 %v288_v14  ;;  %v290_v3 = vpack.c.bf16 %v284_v15, %v284_v15 }
  0x44   : > { %541 = vmatprep.subr.msk.bf16.mxu0 %vm323_vm0, %v291_v17 }
  0x45   : > { %v375_v18 = vsel %vm323_vm0, %v290_v3, 0 }
  0x47   : > { %385 = vmatpush1.bf16.msra.mxu0 %v375_v18 }
  0x4a   : > { %542 = vmatmul.mubr.msk.bf16.vlgmr.msra.gmra.mrb[0].mxu0 %vm319_vm1, %v292_v8 }
  0xfd   : > { %v364_v19 = vpop.f32.mrb[0].mxu1 }
  0xfe   : > { %v366_v20 = vpop.f32.mrb[1].mxu1 }
  0xff   : > { %v368_v21 = vpop.f32.mrb[2].mxu1 }
 0x100   : > { %v369_v16 = vpop.f32.mrb[3].mxu1 }
 0x11d   : > { %v414_v22 = vpop.f32.mrb[0].mxu0 }
 0x11e   : > { %v415_v23 = vadd.f32 %v414_v22, %v364_v19  ;;  %v416_v24 = vpop.f32.mrb[1].mxu0 }
 0x11f   : > { %v417_v25 = vadd.f32 %v416_v24, %v366_v20  ;;  %v418_v26 = vpop.f32.mrb[2].mxu0 }
 0x120   : > { %421 = vst [vmem:[%s188_s11] sm:$0xff] %v415_v23  ;;  %v419_v27 = vpop.f32.mrb[3].mxu0 }
 0x121   : > { %422 = vst [vmem:[%s188_s11 + $0x8] sm:$0xff] %v417_v25 }
 0x122   : > { %667 = shalt.err (!%p664_p5)
}
 0x123   : > { %s668_s30 = scalar_lea.hbm %s905_s23, 256  ;;  %s672_s6 = scalar_lea.hbm %s955_s3, 512 }
 0x124   : > { %p669_p6 = scmp.ne.s32.totalorder %s905_s23, %s668_s30  ;;  %p673_p10 = scmp.lt.u32.totalorder %s905_s23, %s955_s3 }
 0x125   : > { %p674_p11 = scmp.lt.u32.totalorder %s672_s6, %s668_s30  ;;  %p676_p13 = scmp.lt.u32.totalorder %s668_s30, %s905_s23 }
 0x126   : > { %p670_p7 = pnand %p669_p6, %p796_p4 }
 0x127   : > { %p675_p12 = por %p674_p11, %p673_p10 }
 0x128   : > { %p671_p9 = pneg %p670_p7 }
 0x129   : > { %p677_p0 = por %p676_p13, %p675_p12 }
 0x12b   : > { %p678_p1 = pnand %p677_p0, %p671_p9 }
 0x12d   : > { %681 = shalt.err (!%p678_p1)
}
 0x12e   : > { %552 = dma.vmem_to_hbm [thread:$0]  (%p796_p4), %s907_s18, 256, %s905_s23, %s424_s15  }
 0x12f PF: > { %p558_p2 = scmp.ge.s32.totalorder %s732_s17, 2  ;;  %s452_s9 = sand.u32 1, %s712_s12  }
 0x130   : > { %s453_s10 = scalar_lea.sflag [#allocation3], %s452_s9 }
 0x131   : > { %p555_p3 = pnand %p558_p2, %p803_p8 }
 0x133   : > { %707 = dma.done.wait (!%p555_p3), %s453_s10, 256  }
 0x134   : > { %709 = vsyncadd (!%p555_p3), %s453_s10, 4294967040  ;;  %s16_s17 = sadd.s32 1, %s732_s17   ;;  %s958_s12 = smov %s716_s13 }
 0x135   : > { %p13_p5 = scmp.ge.s32.totalorder %s16_s17, 4   ;;  %s959_s13 = smov %s720_s14 }
 0x136   : > { %s960_s14 = smov %s809_s25  ;;  %s961_s15 = smov %s728_s16 }
 0x137   : > { %s962_s16 = smov %s964_s20  ;;  %15 = sbr.rel (!%p13_p5) target bundleno = 4 (0x4), region = 67 }
 0x13e   :  { %458 = vsyncpa [#allocation3], 1 }
 0x13f   :  { %460 = vsyncpa [#allocation3 + $0x1], 1 }

</bundles_post_ra>
